<compile_context>
chip_gen: v6e
topology: v6e:2x2x1
jax: 0.10.0
libtpu: 0.0.40
codegen_flags: <defaults>
</compile_context>

<pallas_src>
import functools
import math

import jax
import jax.numpy as jnp
from jax.experimental import pallas as pl
from jax.experimental.pallas import tpu as pltpu


def _pos_encoder_kernel(*refs, p, mode):
    """y = x + pe, then (optionally) inverted dropout.

    mode == "eval":  refs = (x_ref, pe_ref, o_ref)
    mode == "bits":  refs = (x_ref, pe_ref, bits_ref, o_ref)   host RNG bits
    mode == "prng":  refs = (seed_ref, x_ref, pe_ref, o_ref)   on-chip PRNG
    """
    if mode == "prng":
        seed_ref, x_ref, pe_ref, o_ref = refs
    elif mode == "bits":
        x_ref, pe_ref, bits_ref, o_ref = refs
    else:
        x_ref, pe_ref, o_ref = refs

    # pe_ref is either the same shape as x_ref (folded 2-D layout) or
    # (TS, 1, E), which broadcasts over the batch/sublane axis.
    y = x_ref[...].astype(jnp.float32) + pe_ref[...].astype(jnp.float32)

    if mode != "eval":
        # Inverted dropout via integer threshold: drop iff bits < p * 2^32.
        # TODO(synk): torch.nn.Dropout's exact RNG stream cannot be
        # bit-reproduced; only the inverted-dropout distribution/semantics are.
        threshold = jnp.uint32(min(int(round(p * 4294967296.0)), 4294967295))
        inv_keep = jnp.float32(1.0 / (1.0 - p))
        if mode == "prng":
            # Per-block seed so every grid tile draws an independent mask.
            pltpu.prng_seed(seed_ref[0] + pl.program_id(0))
            bits = pltpu.prng_random_bits(y.shape)
            if bits.dtype != jnp.uint32:
                bits = pltpu.bitcast(bits, jnp.uint32)
        else:
            bits = bits_ref[...]
        keep = bits >= threshold
        y = jnp.where(keep, y * inv_keep, jnp.zeros_like(y))

    o_ref[...] = y.astype(o_ref.dtype)


def make_positional_table(max_len, emb_size):
    """Sinusoidal table, identical math to the PyTorch __init__ (shape (L, E))."""
    position = jnp.arange(max_len, dtype=jnp.float32)[:, None]            # (L, 1)
    div_term = jnp.exp(
        jnp.arange(0, emb_size, 2, dtype=jnp.float32)
        * (-math.log(10000.0) / emb_size))                                # (E/2,)
    pe = jnp.zeros((max_len, emb_size), dtype=jnp.float32)
    pe = pe.at[:, 0::2].set(jnp.sin(position * div_term))
    pe = pe.at[:, 1::2].set(jnp.cos(position * div_term))
    return pe                                                              # (L, E)


def _pick_seq_tile(seq_len, row_bytes, target_block_bytes):
    """Largest sequence tile (multiple of 8) whose block is <= target bytes."""
    if seq_len <= 8:
        return seq_len
    ts = max(1, target_block_bytes // max(1, row_bytes))
    ts = max(8, (ts // 8) * 8)
    return seq_len if ts >= seq_len else ts


def position_encoder_forward(x, pe, *, dropout=0.1, training=False, seed=0,
                             block_bytes=2 * 1024 * 1024):
    """x: (S, B, E); pe: (max_len, E).  Matches PositionEncoder.forward."""
    S, B, E = x.shape
    p = float(dropout)
    apply_dropout = bool(training) and p > 0.0
    on_tpu = jax.default_backend() == "tpu"

    pe_s = pe[:S].astype(x.dtype)                       # glue: static slice
    lane_dense = (E % 128 == 0)

    row_bytes = B * E * x.dtype.itemsize
    ts = _pick_seq_tile(S, row_bytes, block_bytes)
    grid = (pl.cdiv(S, ts),)

    if lane_dense:
        # Natural layout: E already fills whole 128-lane vregs; broadcast pe
        # over the batch (sublane) axis in-kernel -> no extra HBM stream.
        xk = x
        pek = pe_s[:, None, :]                           # (S, 1, E)
        data_spec = pl.BlockSpec((ts, B, E), lambda i: (i, 0, 0))
        pe_spec = pl.BlockSpec((ts, 1, E), lambda i: (i, 0, 0))
        out_shape = jax.ShapeDtypeStruct((S, B, E), x.dtype)
    else:
        # Fold (S, B, E) -> (S, B*E) so the output last dim is lane-dense;
        # pre-tile pe across batch once in the wrapper (pe2[s, b*E+e] = pe[s, e]).
        xk = x.reshape(S, B * E)
        pek = jnp.tile(pe_s, (1, B))                     # (S, B*E)
        data_spec = pl.BlockSpec((ts, B * E), lambda i: (i, 0))
        pe_spec = pl.BlockSpec((ts, B * E), lambda i: (i, 0))
        out_shape = jax.ShapeDtypeStruct((S, B * E), x.dtype)

    if not apply_dropout:
        mode = "eval"
        args = (xk, pek)
        in_specs = [data_spec, pe_spec]
    elif on_tpu:
        mode = "prng"
        seed_arr = jnp.asarray([seed], dtype=jnp.int32)
        args = (seed_arr, xk, pek)
        in_specs = [pl.BlockSpec(memory_space=pltpu.MemorySpace.SMEM),
                    data_spec, pe_spec]
    else:
        # Fallback for backends where the TPU PRNG primitives do not lower
        # (e.g. CPU / interpret mode): stream host-generated random bits.
        mode = "bits"
        bits = jax.random.bits(jax.random.PRNGKey(seed), xk.shape,
                               dtype=jnp.uint32)
        args = (xk, pek, bits)
        in_specs = [data_spec, pe_spec, data_spec]

    call_kwargs = {}
    if on_tpu:
        call_kwargs["compiler_params"] = pltpu.CompilerParams(
            dimension_semantics=("parallel",),
            vmem_limit_bytes=32 * 1024 * 1024)
    # NOTE: callers that can donate x may additionally pass
    # input_output_aliases mapping x's arg index to output 0 to reuse its
    # HBM buffer; omitted here to keep x live for the reference check.

    out = pl.pallas_call(
        functools.partial(_pos_encoder_kernel, p=p, mode=mode),
        out_shape=out_shape,
        grid=grid,
        in_specs=in_specs,
        out_specs=data_spec,
        **call_kwargs,
    )(*args)

    return out if lane_dense else out.reshape(S, B, E)


if __name__ == "__main__":
    max_len = 16
    seq_len, batch, emb_size = 8, 2, 32

    key = jax.random.PRNGKey(0)
    x = jax.random.normal(key, (seq_len, batch, emb_size), dtype=jnp.float32)
    pe = make_positional_table(max_len, emb_size)
    ref = x + pe[:seq_len][:, None, :]

    # Eval mode (dropout = identity); exercises the folded lane-dense path.
    out_eval = jax.block_until_ready(
        position_encoder_forward(x, pe, dropout=0.1, training=False))
    assert out_eval.shape == (seq_len, batch, emb_size)
    assert jnp.allclose(out_eval, ref, atol=1e-6), "eval-mode mismatch"

    # Training mode: inverted dropout (on-chip PRNG on TPU, host bits otherwise).
    out_train = jax.block_until_ready(
        position_encoder_forward(x, pe, dropout=0.1, training=True, seed=42))
    assert out_train.shape == (seq_len, batch, emb_size)
    dropped = out_train == 0.0
    kept_ok = jnp.allclose(jnp.where(dropped, 0.0, out_train),
                           jnp.where(dropped, 0.0, ref / 0.9),
                           atol=1e-5, rtol=1e-5)
    assert kept_ok, "train-mode dropout scaling mismatch"

    # emb_size % 128 == 0 path: natural (S, B, E) layout with in-kernel pe
    # broadcast over batch.
    emb128 = 128
    x128 = jax.random.normal(jax.random.PRNGKey(1),
                             (seq_len, batch, emb128), dtype=jnp.float32)
    pe128 = make_positional_table(max_len, emb128)
    ref128 = x128 + pe128[:seq_len][:, None, :]

    out128 = jax.block_until_ready(
        position_encoder_forward(x128, pe128, dropout=0.1, training=False))
    assert jnp.allclose(out128, ref128, atol=1e-6), "E=128 eval mismatch"

    out128_tr = jax.block_until_ready(
        position_encoder_forward(x128, pe128, dropout=0.1, training=True, seed=7))
    d128 = out128_tr == 0.0
    assert jnp.allclose(jnp.where(d128, 0.0, out128_tr),
                        jnp.where(d128, 0.0, ref128 / 0.9),
                        atol=1e-5, rtol=1e-5), "E=128 train-mode mismatch"

    print("KERNEL_OK")
</pallas_src>

<mosaic_0001>
module attributes {stable_mosaic.version = 11 : i64} {
  func.func @_pos_encoder_kernel(%arg0: i32, %arg1: memref<8x64xf32, #tpu.memory_space<vmem>>, %arg2: memref<8x64xf32, #tpu.memory_space<vmem>>, %arg3: memref<8x64xf32, #tpu.memory_space<vmem>>) attributes {dimension_semantics = [#tpu.dimension_semantics<arbitrary>], iteration_bounds = array<i64: 1>, scalar_prefetch = 0 : i64, scratch_operands = 0 : i64, tpu.core_type = #tpu.core_type<tc>, window_params = [{transform_indices = @transform_0, window_bounds = array<i64: 8, 64>}, {transform_indices = @transform_1, window_bounds = array<i64: 8, 64>}, {transform_indices = @transform_2, window_bounds = array<i64: 8, 64>}]} {
    %c0 = arith.constant 0 : index
    %c0_0 = arith.constant 0 : index
    %0 = vector.load %arg1[%c0, %c0_0] : memref<8x64xf32, #tpu.memory_space<vmem>>, vector<8x64xf32>
    %c0_1 = arith.constant 0 : index
    %c0_2 = arith.constant 0 : index
    %1 = vector.load %arg2[%c0_1, %c0_2] : memref<8x64xf32, #tpu.memory_space<vmem>>, vector<8x64xf32>
    %2 = arith.addf %0, %1 : vector<8x64xf32>
    %c0_3 = arith.constant 0 : index
    %c0_4 = arith.constant 0 : index
    %3 = vector.load %arg3[%c0_3, %c0_4] : memref<8x64xf32, #tpu.memory_space<vmem>>, vector<8x64xf32>
    tpu.vector_store %arg3[%c0_3, %c0_4], %2 {strides = array<i32>} : memref<8x64xf32, #tpu.memory_space<vmem>>, vector<8x64xf32>,
    return
  }
  func.func @transform_0(%arg0: i32) -> (i32, i32) {
    %c0_i32 = arith.constant 0 : i32
    %c0_i32_0 = arith.constant 0 : i32
    return %arg0, %c0_i32 : i32, i32
  }
  func.func @transform_1(%arg0: i32) -> (i32, i32) {
    %c0_i32 = arith.constant 0 : i32
    %c0_i32_0 = arith.constant 0 : i32
    return %arg0, %c0_i32 : i32, i32
  }
  func.func @transform_2(%arg0: i32) -> (i32, i32) {
    %c0_i32 = arith.constant 0 : i32
    %c0_i32_0 = arith.constant 0 : i32
    return %arg0, %c0_i32 : i32, i32
  }
}

</mosaic_0001>

<bundles_post_ra>
// kernel: tpu_custom_call.1
= control target key start
LH: loop header
LB: loop body
LE: loop exit
PB: predicated region body
PF: predicated region fallthrough
CT: control target
= control target key end

     0   :  { %7 = vsyncpa [#allocation3], 0  ;;  %s153_s0 = inlined_call_operand.hbm [shape: f32[8,64], index: 0, kind: input, shape index: {}]   ;;  %s154_s1 = inlined_call_operand.hbm [shape: f32[8,64], index: 1, kind: input, shape index: {}]   ;;  %s155_s2 = inlined_call_operand.hbm [shape: f32[8,64], index: 2, kind: output, shape index: {}]  }
   0x1   :  { %8 = vsyncpa [#allocation6], 0 }
   0x2   :  { %9 = vsyncpa [#allocation4], 0  ;;  %s126_s9 = smov [#allocation2]   ;;  %s127_s11 = smov [#allocation5]  }
   0x3   :  { %s16_s10 = sshll.u32 %s126_s9, 4  ;;  %s26_s12 = sshll.u32 %s127_s11, 4  ;;  %s17_s10 = int_to_ptr.vmem [resolvable:$true] %s16_s10  ;;  %s27_s12 = int_to_ptr.vmem [resolvable:$true] %s26_s12 }
   0x4   :  { %s68_s13 = scalar_lea.vmem %s17_s10, 128  ;;  %p73_p1 = scmp.lt.s32.totalorder %s17_s10, %s17_s10 }
   0x5   :  { %p69_p0 = scmp.ne.s32.totalorder %s17_s10, %s68_s13  ;;  %p74_p2 = scmp.lt.s32.totalorder %s68_s13, %s68_s13 }
   0x7   :  { %p75_p3 = por %p74_p2, %p73_p1 }
   0x9   :  { %p76_p4 = pnand %p75_p3, %p69_p0 }
   0xb   :  { %79 = shalt.err (!%p76_p4)
}
   0xc   :  { %19 = dma.hbm_to_vmem [thread:$0]  %s153_s0, 128, %s17_s10, [#allocation3]  }
   0xd   :  { %s88_s16 = scalar_lea.vmem %s27_s12, 128  ;;  %p93_p6 = scmp.lt.s32.totalorder %s27_s12, %s27_s12 }
   0xe   :  { %p89_p5 = scmp.ne.s32.totalorder %s27_s12, %s88_s16  ;;  %p94_p7 = scmp.lt.s32.totalorder %s88_s16, %s88_s16 }
  0x10   :  { %p95_p8 = por %p94_p7, %p93_p6 }
  0x12   :  { %p96_p9 = pnand %p95_p8, %p89_p5 }
  0x14   :  { %99 = shalt.err (!%p96_p9)
}
  0x15   :  { %29 = dma.hbm_to_vmem [thread:$0]  %s154_s1, 128, %s27_s12, [#allocation6]  }
  0x16   :  { %120 = dma.done.wait [#allocation3], 128  }
  0x17   :  { %121 = vsyncadd [#allocation3], 4294967168 }
  0x18   :  { %122 = dma.done.wait [#allocation6], 128  }
  0x19   :  { %123 = vsyncadd [#allocation6], 4294967168  ;;  %s128_s19 = smov [#allocation7]   ;;  %v36_v0 = vld [vmem:[#allocation2] sm:$0xff]  ;;  %v37_v1 = vld [vmem:[#allocation5] sm:$0xff]  ;;  %vm39_vm0 = vcmask 523264  }
  0x1a   :  { %s47_s20 = sshll.u32 %s128_s19, 4  ;;  %v38_v2 = vadd.f32 %v37_v1, %v36_v0  ;;  %s48_s20 = int_to_ptr.vmem [resolvable:$true] %s47_s20 }
  0x1b   :  { %s100_s0 = scalar_lea.vmem %s48_s20, 128  ;;  %p105_p11 = scmp.lt.s32.totalorder %s48_s20, %s48_s20 }
  0x1c   :  { %40 = vst.msk [vmem:[#allocation7] sm:$0xff] %vm39_vm0, %v38_v2  ;;  %p101_p10 = scmp.ne.s32.totalorder %s48_s20, %s100_s0  ;;  %p106_p12 = scmp.lt.s32.totalorder %s100_s0, %s100_s0 }
  0x1e   :  { %p107_p13 = por %p106_p12, %p105_p11 }
  0x20   :  { %p108_p0 = pnand %p107_p13, %p101_p10 }
  0x22   :  { %111 = shalt.err (!%p108_p0)
}
  0x23   :  { %50 = dma.vmem_to_hbm [thread:$0]  %s48_s20, 128, %s155_s2, [#allocation4]  }
  0x24   :  { %124 = dma.done.wait [#allocation4], 128  }
  0x25   :  { %125 = vsyncadd [#allocation4], 4294967168 }
  0x26   :  { %54 = vsyncpa [#allocation3], 1 }
  0x27   :  { %55 = vsyncpa [#allocation6], 1 }
  0x28   :  { %56 = vsyncpa [#allocation4], 1 }

</bundles_post_ra>
